<compile_context>
chip_gen: v6e
topology: v6e:2x2x1
jax: 0.10.0
libtpu: 0.0.40
codegen_flags: <defaults>
</compile_context>

<pallas_src>
import functools

import jax
import jax.numpy as jnp
from jax import lax
from jax.experimental import pallas as pl
from jax.experimental.pallas import tpu as pltpu

NUM_TIME_STEPS = 1000
BETA_START = 1e-4
BETA_END = 0.02
_STATIC_UNROLL_MAX = 32  # above this, use fori_loop instead of Python unroll


def _ddpm_gather_kernel(t_ref, alpha_ref, beta_out_ref, alpha_out_ref):
    """Scalar lookup of (beta[t], alpha[t]) entirely on the scalar ALUs.

    t_ref         : SMEM (N,) int32   timestep indices
    alpha_ref     : SMEM (T,) float32 cumprod(1 - beta) table
    beta_out_ref  : SMEM (N,) float32 beta[t]   (computed analytically)
    alpha_out_ref : SMEM (N,) float32 alpha[t]  (table gather)
    """
    n = t_ref.shape[0]
    num_steps = alpha_ref.shape[0]
    beta_start = jnp.float32(BETA_START)
    beta_step = jnp.float32((BETA_END - BETA_START) / (num_steps - 1))

    def one(i):
        ti = t_ref[i]
        # Clamp to the valid table range (defensive; rides free scalar slots).
        ti = jnp.maximum(jnp.minimum(ti, num_steps - 1), 0)
        # beta via one scalar FMA instead of a second table gather.
        beta_out_ref[i] = beta_start + ti.astype(jnp.float32) * beta_step
        alpha_out_ref[i] = alpha_ref[ti]

    if n <= _STATIC_UNROLL_MAX:
        # Tiny batch: fully static unroll, pure scalar loads/stores.
        for i in range(n):
            one(i)
    else:
        # Larger batch: bounded instruction footprint, scalar slots saturated.
        def body(i, carry):
            one(i)
            return carry

        lax.fori_loop(0, n, body, None, unroll=8)


@jax.jit
def ddpm_scheduler_forward(t, alpha_table):
    """Pallas wrapper: returns (beta[t], alpha[t]) for int32 timestep indices."""
    n = t.shape[0]
    beta_t, alpha_t = pl.pallas_call(
        _ddpm_gather_kernel,
        out_shape=(
            jax.ShapeDtypeStruct((n,), jnp.float32),
            jax.ShapeDtypeStruct((n,), jnp.float32),
        ),
        in_specs=[
            pl.BlockSpec(memory_space=pltpu.MemorySpace.SMEM),  # t indices
            pl.BlockSpec(memory_space=pltpu.MemorySpace.SMEM),  # alpha table
        ],
        out_specs=(
            pl.BlockSpec(memory_space=pltpu.MemorySpace.SMEM),  # beta[t]
            pl.BlockSpec(memory_space=pltpu.MemorySpace.SMEM),  # alpha[t]
        ),
    )(t, alpha_table)
    return beta_t, alpha_t


@functools.lru_cache(maxsize=None)
def _make_tables_cached(num_time_steps: int):
    beta = jnp.linspace(BETA_START, BETA_END, num_time_steps, dtype=jnp.float32)
    alpha = jnp.cumprod(1.0 - beta, axis=0).astype(jnp.float32)
    return beta, alpha


def make_ddpm_tables(num_time_steps: int = NUM_TIME_STEPS):
    """Deterministic parameter setup, mirroring DDPMScheduler.__init__."""
    return _make_tables_cached(num_time_steps)


if __name__ == "__main__":
    key = jax.random.PRNGKey(0)

    # Small batch of timestep indices, as the forward pass implies.
    batch = 8
    t = jax.random.randint(key, (batch,), 0, NUM_TIME_STEPS, dtype=jnp.int32)

    beta, alpha = make_ddpm_tables(NUM_TIME_STEPS)

    beta_t, alpha_t = ddpm_scheduler_forward(t, alpha)
    jax.block_until_ready((beta_t, alpha_t))

    # Pure-JAX reference (direct indexing) for correctness.
    beta_ref = beta[t]
    alpha_ref = alpha[t]
    assert beta_t.shape == (batch,) and beta_t.dtype == jnp.float32
    assert alpha_t.shape == (batch,) and alpha_t.dtype == jnp.float32
    # beta is computed analytically (one FMA) -> allow last-ulp difference
    # vs. the linspace table.
    assert jnp.allclose(beta_t, beta_ref, rtol=1e-5, atol=1e-9)
    # alpha is gathered from the exact same table -> bit-exact.
    assert jnp.allclose(alpha_t, alpha_ref, rtol=0.0, atol=0.0)

    print("KERNEL_OK")
</pallas_src>

<mosaic_0001>
module attributes {stable_mosaic.version = 11 : i64} {
  func.func @_ddpm_gather_kernel(%arg0: memref<8xi32, #tpu.memory_space<smem>>, %arg1: memref<1000xf32, #tpu.memory_space<smem>>, %arg2: memref<8xf32, #tpu.memory_space<smem>>, %arg3: memref<8xf32, #tpu.memory_space<smem>>) attributes {dimension_semantics = [], scalar_prefetch = 0 : i64, scratch_operands = 0 : i64, tpu.core_type = #tpu.core_type<tc>} {
    %c0 = arith.constant 0 : index
    %0 = memref.load %arg0[%c0] : memref<8xi32, #tpu.memory_space<smem>>
    %c999_i32 = arith.constant 999 : i32
    %1 = arith.minsi %0, %c999_i32 : i32
    %c0_i32 = arith.constant 0 : i32
    %2 = arith.maxsi %1, %c0_i32 : i32
    %3 = arith.sitofp %2 : i32 to f32
    %cst = arith.constant 1.99199203E-5 : f32
    %4 = arith.mulf %3, %cst : f32
    %cst_0 = arith.constant 9.99999974E-5 : f32
    %5 = arith.addf %cst_0, %4 : f32
    %c0_1 = arith.constant 0 : index
    %6 = memref.load %arg2[%c0_1] : memref<8xf32, #tpu.memory_space<smem>>
    memref.store %5, %arg2[%c0_1] : memref<8xf32, #tpu.memory_space<smem>>
    %7 = arith.index_cast %2 : i32 to index
    %8 = memref.load %arg1[%7] : memref<1000xf32, #tpu.memory_space<smem>>
    %c0_2 = arith.constant 0 : index
    %9 = memref.load %arg3[%c0_2] : memref<8xf32, #tpu.memory_space<smem>>
    memref.store %8, %arg3[%c0_2] : memref<8xf32, #tpu.memory_space<smem>>
    %c1 = arith.constant 1 : index
    %10 = memref.load %arg0[%c1] : memref<8xi32, #tpu.memory_space<smem>>
    %c999_i32_3 = arith.constant 999 : i32
    %11 = arith.minsi %10, %c999_i32_3 : i32
    %c0_i32_4 = arith.constant 0 : i32
    %12 = arith.maxsi %11, %c0_i32_4 : i32
    %13 = arith.sitofp %12 : i32 to f32
    %cst_5 = arith.constant 1.99199203E-5 : f32
    %14 = arith.mulf %13, %cst_5 : f32
    %cst_6 = arith.constant 9.99999974E-5 : f32
    %15 = arith.addf %cst_6, %14 : f32
    %c1_7 = arith.constant 1 : index
    %16 = memref.load %arg2[%c1_7] : memref<8xf32, #tpu.memory_space<smem>>
    memref.store %15, %arg2[%c1_7] : memref<8xf32, #tpu.memory_space<smem>>
    %17 = arith.index_cast %12 : i32 to index
    %18 = memref.load %arg1[%17] : memref<1000xf32, #tpu.memory_space<smem>>
    %c1_8 = arith.constant 1 : index
    %19 = memref.load %arg3[%c1_8] : memref<8xf32, #tpu.memory_space<smem>>
    memref.store %18, %arg3[%c1_8] : memref<8xf32, #tpu.memory_space<smem>>
    %c2 = arith.constant 2 : index
    %20 = memref.load %arg0[%c2] : memref<8xi32, #tpu.memory_space<smem>>
    %c999_i32_9 = arith.constant 999 : i32
    %21 = arith.minsi %20, %c999_i32_9 : i32
    %c0_i32_10 = arith.constant 0 : i32
    %22 = arith.maxsi %21, %c0_i32_10 : i32
    %23 = arith.sitofp %22 : i32 to f32
    %cst_11 = arith.constant 1.99199203E-5 : f32
    %24 = arith.mulf %23, %cst_11 : f32
    %cst_12 = arith.constant 9.99999974E-5 : f32
    %25 = arith.addf %cst_12, %24 : f32
    %c2_13 = arith.constant 2 : index
    %26 = memref.load %arg2[%c2_13] : memref<8xf32, #tpu.memory_space<smem>>
    memref.store %25, %arg2[%c2_13] : memref<8xf32, #tpu.memory_space<smem>>
    %27 = arith.index_cast %22 : i32 to index
    %28 = memref.load %arg1[%27] : memref<1000xf32, #tpu.memory_space<smem>>
    %c2_14 = arith.constant 2 : index
    %29 = memref.load %arg3[%c2_14] : memref<8xf32, #tpu.memory_space<smem>>
    memref.store %28, %arg3[%c2_14] : memref<8xf32, #tpu.memory_space<smem>>
    %c3 = arith.constant 3 : index
    %30 = memref.load %arg0[%c3] : memref<8xi32, #tpu.memory_space<smem>>
    %c999_i32_15 = arith.constant 999 : i32
    %31 = arith.minsi %30, %c999_i32_15 : i32
    %c0_i32_16 = arith.constant 0 : i32
    %32 = arith.maxsi %31, %c0_i32_16 : i32
    %33 = arith.sitofp %32 : i32 to f32
    %cst_17 = arith.constant 1.99199203E-5 : f32
    %34 = arith.mulf %33, %cst_17 : f32
    %cst_18 = arith.constant 9.99999974E-5 : f32
    %35 = arith.addf %cst_18, %34 : f32
    %c3_19 = arith.constant 3 : index
    %36 = memref.load %arg2[%c3_19] : memref<8xf32, #tpu.memory_space<smem>>
    memref.store %35, %arg2[%c3_19] : memref<8xf32, #tpu.memory_space<smem>>
    %37 = arith.index_cast %32 : i32 to index
    %38 = memref.load %arg1[%37] : memref<1000xf32, #tpu.memory_space<smem>>
    %c3_20 = arith.constant 3 : index
    %39 = memref.load %arg3[%c3_20] : memref<8xf32, #tpu.memory_space<smem>>
    memref.store %38, %arg3[%c3_20] : memref<8xf32, #tpu.memory_space<smem>>
    %c4 = arith.constant 4 : index
    %40 = memref.load %arg0[%c4] : memref<8xi32, #tpu.memory_space<smem>>
    %c999_i32_21 = arith.constant 999 : i32
    %41 = arith.minsi %40, %c999_i32_21 : i32
    %c0_i32_22 = arith.constant 0 : i32
    %42 = arith.maxsi %41, %c0_i32_22 : i32
    %43 = arith.sitofp %42 : i32 to f32
    %cst_23 = arith.constant 1.99199203E-5 : f32
    %44 = arith.mulf %43, %cst_23 : f32
    %cst_24 = arith.constant 9.99999974E-5 : f32
    %45 = arith.addf %cst_24, %44 : f32
    %c4_25 = arith.constant 4 : index
    %46 = memref.load %arg2[%c4_25] : memref<8xf32, #tpu.memory_space<smem>>
    memref.store %45, %arg2[%c4_25] : memref<8xf32, #tpu.memory_space<smem>>
    %47 = arith.index_cast %42 : i32 to index
    %48 = memref.load %arg1[%47] : memref<1000xf32, #tpu.memory_space<smem>>
    %c4_26 = arith.constant 4 : index
    %49 = memref.load %arg3[%c4_26] : memref<8xf32, #tpu.memory_space<smem>>
    memref.store %48, %arg3[%c4_26] : memref<8xf32, #tpu.memory_space<smem>>
    %c5 = arith.constant 5 : index
    %50 = memref.load %arg0[%c5] : memref<8xi32, #tpu.memory_space<smem>>
    %c999_i32_27 = arith.constant 999 : i32
    %51 = arith.minsi %50, %c999_i32_27 : i32
    %c0_i32_28 = arith.constant 0 : i32
    %52 = arith.maxsi %51, %c0_i32_28 : i32
    %53 = arith.sitofp %52 : i32 to f32
    %cst_29 = arith.constant 1.99199203E-5 : f32
    %54 = arith.mulf %53, %cst_29 : f32
    %cst_30 = arith.constant 9.99999974E-5 : f32
    %55 = arith.addf %cst_30, %54 : f32
    %c5_31 = arith.constant 5 : index
    %56 = memref.load %arg2[%c5_31] : memref<8xf32, #tpu.memory_space<smem>>
    memref.store %55, %arg2[%c5_31] : memref<8xf32, #tpu.memory_space<smem>>
    %57 = arith.index_cast %52 : i32 to index
    %58 = memref.load %arg1[%57] : memref<1000xf32, #tpu.memory_space<smem>>
    %c5_32 = arith.constant 5 : index
    %59 = memref.load %arg3[%c5_32] : memref<8xf32, #tpu.memory_space<smem>>
    memref.store %58, %arg3[%c5_32] : memref<8xf32, #tpu.memory_space<smem>>
    %c6 = arith.constant 6 : index
    %60 = memref.load %arg0[%c6] : memref<8xi32, #tpu.memory_space<smem>>
    %c999_i32_33 = arith.constant 999 : i32
    %61 = arith.minsi %60, %c999_i32_33 : i32
    %c0_i32_34 = arith.constant 0 : i32
    %62 = arith.maxsi %61, %c0_i32_34 : i32
    %63 = arith.sitofp %62 : i32 to f32
    %cst_35 = arith.constant 1.99199203E-5 : f32
    %64 = arith.mulf %63, %cst_35 : f32
    %cst_36 = arith.constant 9.99999974E-5 : f32
    %65 = arith.addf %cst_36, %64 : f32
    %c6_37 = arith.constant 6 : index
    %66 = memref.load %arg2[%c6_37] : memref<8xf32, #tpu.memory_space<smem>>
    memref.store %65, %arg2[%c6_37] : memref<8xf32, #tpu.memory_space<smem>>
    %67 = arith.index_cast %62 : i32 to index
    %68 = memref.load %arg1[%67] : memref<1000xf32, #tpu.memory_space<smem>>
    %c6_38 = arith.constant 6 : index
    %69 = memref.load %arg3[%c6_38] : memref<8xf32, #tpu.memory_space<smem>>
    memref.store %68, %arg3[%c6_38] : memref<8xf32, #tpu.memory_space<smem>>
    %c7 = arith.constant 7 : index
    %70 = memref.load %arg0[%c7] : memref<8xi32, #tpu.memory_space<smem>>
    %c999_i32_39 = arith.constant 999 : i32
    %71 = arith.minsi %70, %c999_i32_39 : i32
    %c0_i32_40 = arith.constant 0 : i32
    %72 = arith.maxsi %71, %c0_i32_40 : i32
    %73 = arith.sitofp %72 : i32 to f32
    %cst_41 = arith.constant 1.99199203E-5 : f32
    %74 = arith.mulf %73, %cst_41 : f32
    %cst_42 = arith.constant 9.99999974E-5 : f32
    %75 = arith.addf %cst_42, %74 : f32
    %c7_43 = arith.constant 7 : index
    %76 = memref.load %arg2[%c7_43] : memref<8xf32, #tpu.memory_space<smem>>
    memref.store %75, %arg2[%c7_43] : memref<8xf32, #tpu.memory_space<smem>>
    %77 = arith.index_cast %72 : i32 to index
    %78 = memref.load %arg1[%77] : memref<1000xf32, #tpu.memory_space<smem>>
    %c7_44 = arith.constant 7 : index
    %79 = memref.load %arg3[%c7_44] : memref<8xf32, #tpu.memory_space<smem>>
    memref.store %78, %arg3[%c7_44] : memref<8xf32, #tpu.memory_space<smem>>
    return
  }
}

</mosaic_0001>

<bundles_post_ra>
// kernel: ddpm_scheduler_forward.1
= control target key start
LH: loop header
LB: loop body
LE: loop exit
PB: predicated region body
PF: predicated region fallthrough
CT: control target
= control target key end

     0   :  { %9 = vsyncpa [#allocation3], 0  ;;  %s338_s0 = inlined_call_operand.hbm [shape: s32[8], index: 0, kind: input, shape index: {}]   ;;  %s339_s1 = inlined_call_operand.hbm [shape: f32[1000], index: 1, kind: input, shape index: {}]   ;;  %s340_s2 = inlined_call_operand.hbm [shape: f32[8], index: 2, kind: output, shape index: {0}]   ;;  %s341_s3 = inlined_call_operand.hbm [shape: f32[8], index: 3, kind: output, shape index: {1}]  }
   0x1   :  { %10 = vsyncpa [#allocation6], 0 }
   0x2   :  { %11 = vsyncpa [#allocation4], 0 }
   0x3   :  { %12 = vsyncpa [#allocation9], 0  ;;  %s274_s12 = smov [#allocation2]   ;;  %s275_s15 = smov [#allocation5]  }
   0x4   :  { %20 = dma.hbm_to_smem %s338_s0, 16, %s274_s12, [#allocation3]  }
   0x5   :  { %28 = dma.hbm_to_smem %s339_s1, 128, %s275_s15, [#allocation6]  }
   0x6   :  { %266 = dma.done.wait [#allocation3], 16  }
   0x7   :  { %267 = vsyncadd [#allocation3], 4294967280 }
   0x8   :  { %268 = dma.done.wait [#allocation6], 128  }
   0x9   :  { %269 = vsyncadd [#allocation6], 4294967168 }
   0xa   :  { %35 = sfence }
   0xb   :  { %s36_s18 = sld [smem:[#allocation2]] }
   0xc   :  { %s172_s19 = sld [smem:[#allocation2 + $0x1]] }
   0xd   :  { %s178_s20 = sld [smem:[#allocation2 + $0x2]] }
   0xe   :  { %s184_s21 = sld [smem:[#allocation2 + $0x3]] }
   0xf   :  { %s304_s23 = sld [smem:[#allocation2 + $0x4]] }
  0x10   :  { %s306_s25 = sld [smem:[#allocation2 + $0x5]] }
  0x11   :  { %p37_p0 = scmp.lt.s32.totalorder %s36_s18, 999  ;;  %p167_p1 = scmp.gt.s32.totalorder %s36_s18, 0 }
  0x12   :  { %p50_p2 = scmp.lt.s32.totalorder %s172_s19, 999  ;;  %p173_p3 = scmp.gt.s32.totalorder %s172_s19, 0 }
  0x13   :  { %s343_s18 = smov (!%p37_p0, %s36_s18), 999  ;;  %p63_p4 = scmp.lt.s32.totalorder %s178_s20, 999 }
  0x14   :  { %s345_s19 = smov (!%p50_p2, %s172_s19), 999  ;;  %s347_s18 = smov (!%p167_p1, %s343_s18), 0 }
  0x15   :  { %s349_s19 = smov (!%p173_p3, %s345_s19), 0  ;;  %s41_s0 = scvt.s32.f32 %s347_s18 }
  0x16   :  { %s54_s22 = scvt.s32.f32 %s349_s19  ;;  %p76_p5 = scmp.lt.s32.totalorder %s184_s21, 999 }
  0x17   :  { %s42_s1 = smul.f32 1.991992e-05, %s41_s0  ;;  %p179_p6 = scmp.gt.s32.totalorder %s178_s20, 0 }
  0x18   :  { %s55_s24 = smul.f32 1.991992e-05, %s54_s22  ;;  %p185_p7 = scmp.gt.s32.totalorder %s184_s21, 0 }
  0x19   :  { %s43_s26 = sadd.f32 0.0001, %s42_s1  ;;  %s351_s20 = smov (!%p63_p4, %s178_s20), 999 }
  0x1a   :  { %s56_s27 = sadd.f32 0.0001, %s55_s24  ;;  %s353_s21 = smov (!%p76_p5, %s184_s21), 999 }
  0x1b   :  { %45 = sst [smem:[#allocation7]] %s43_s26  ;;  %s355_s20 = smov (!%p179_p6, %s351_s20), 0 }
  0x1c   :  { %58 = sst [smem:[#allocation7 + $0x1]] %s56_s27  ;;  %s357_s21 = smov (!%p185_p7, %s353_s21), 0 }
  0x1d   :  { %s67_s28 = scvt.s32.f32 %s355_s20  ;;  %s313_s29 = sld [smem:[#allocation2 + $0x6]] }
  0x1e   :  { %s80_s30 = scvt.s32.f32 %s357_s21  ;;  %s316_s4 = sld [smem:[#allocation2 + $0x7]] }
  0x1f   :  { %s68_s5 = smul.f32 1.991992e-05, %s67_s28  ;;  %s46_s6 = sld [smem:[#allocation5 + %s347_s18]] }
  0x20   :  { %s81_s7 = smul.f32 1.991992e-05, %s80_s30  ;;  %s59_s8 = sld [smem:[#allocation5 + %s349_s19]] }
  0x21   :  { %s69_s9 = sadd.f32 0.0001, %s68_s5  ;;  %p89_p8 = scmp.lt.s32.totalorder %s304_s23, 999 }
  0x22   :  { %s82_s10 = sadd.f32 0.0001, %s81_s7  ;;  %p102_p9 = scmp.lt.s32.totalorder %s306_s25, 999 }
  0x23   :  { %71 = sst [smem:[#allocation7 + $0x2]] %s69_s9  ;;  %p191_p10 = scmp.gt.s32.totalorder %s304_s23, 0 }
  0x24   :  { %84 = sst [smem:[#allocation7 + $0x3]] %s82_s10  ;;  %p197_p11 = scmp.gt.s32.totalorder %s306_s25, 0 }
  0x25   :  { %s359_s23 = smov (!%p89_p8, %s304_s23), 999  ;;  %s361_s25 = smov (!%p102_p9, %s306_s25), 999 }
  0x26   :  { %s363_s23 = smov (!%p191_p10, %s359_s23), 0  ;;  %s365_s25 = smov (!%p197_p11, %s361_s25), 0 }
  0x27   :  { %s93_s11 = scvt.s32.f32 %s363_s23  ;;  %s106_s12 = scvt.s32.f32 %s365_s25 }
  0x28   :  { %48 = sst [smem:[#allocation8]] %s46_s6  ;;  %p115_p12 = scmp.lt.s32.totalorder %s313_s29, 999 }
  0x29   :  { %s94_s13 = smul.f32 1.991992e-05, %s93_s11  ;;  %61 = sst [smem:[#allocation8 + $0x1]] %s59_s8 }
  0x2a   :  { %s107_s14 = smul.f32 1.991992e-05, %s106_s12  ;;  %p128_p13 = scmp.lt.s32.totalorder %s316_s4, 999 }
  0x2b   :  { %s95_s15 = sadd.f32 0.0001, %s94_s13  ;;  %p203_p0 = scmp.gt.s32.totalorder %s313_s29, 0 }
  0x2c   :  { %s108_s16 = sadd.f32 0.0001, %s107_s14  ;;  %p209_p1 = scmp.gt.s32.totalorder %s316_s4, 0 }
  0x2d   :  { %97 = sst [smem:[#allocation7 + $0x4]] %s95_s15  ;;  %s367_s29 = smov (!%p115_p12, %s313_s29), 999 }
  0x2e   :  { %110 = sst [smem:[#allocation7 + $0x5]] %s108_s16  ;;  %s369_s4 = smov (!%p128_p13, %s316_s4), 999 }
  0x2f   :  { %s371_s29 = smov (!%p203_p0, %s367_s29), 0  ;;  %s373_s4 = smov (!%p209_p1, %s369_s4), 0 }
  0x30   :  { %s119_s17 = scvt.s32.f32 %s371_s29  ;;  %s72_s18 = sld [smem:[#allocation5 + %s355_s20]] }
  0x31   :  { %s132_s19 = scvt.s32.f32 %s373_s4  ;;  %s85_s0 = sld [smem:[#allocation5 + %s357_s21]] }
  0x32   :  { %s120_s22 = smul.f32 1.991992e-05, %s119_s17  ;;  %s98_s1 = sld [smem:[#allocation5 + %s363_s23]] }
  0x33   :  { %s133_s24 = smul.f32 1.991992e-05, %s132_s19  ;;  %s111_s26 = sld [smem:[#allocation5 + %s365_s25]] }
  0x34   :  { %s121_s27 = sadd.f32 0.0001, %s120_s22  ;;  %s276_s30 = smov [#allocation7]  }
  0x35   :  { %s134_s28 = sadd.f32 0.0001, %s133_s24  ;;  %s277_s21 = smov [#allocation8]  }
  0x36   :  { %123 = sst [smem:[#allocation7 + $0x6]] %s121_s27 }
  0x37   :  { %136 = sst [smem:[#allocation7 + $0x7]] %s134_s28 }
  0x38   :  { %147 = dma.smem_to_hbm %s276_s30, 16, %s340_s2, [#allocation4]  }
  0x39   :  { %74 = sst [smem:[#allocation8 + $0x2]] %s72_s18 }
  0x3a   :  { %87 = sst [smem:[#allocation8 + $0x3]] %s85_s0 }
  0x3b   :  { %100 = sst [smem:[#allocation8 + $0x4]] %s98_s1 }
  0x3c   :  { %113 = sst [smem:[#allocation8 + $0x5]] %s111_s26 }
  0x3d   :  { %s124_s20 = sld [smem:[#allocation5 + %s371_s29]] }
  0x3e   :  { %s137_s7 = sld [smem:[#allocation5 + %s373_s4]] }
  0x43   :  { %126 = sst [smem:[#allocation8 + $0x6]] %s124_s20 }
  0x44   :  { %139 = sst [smem:[#allocation8 + $0x7]] %s137_s7 }
  0x45   :  { %155 = dma.smem_to_hbm %s277_s21, 16, %s341_s3, [#allocation9]  }
  0x46   :  { %270 = dma.done.wait [#allocation4], 16  }
  0x47   :  { %271 = vsyncadd [#allocation4], 4294967280 }
  0x48   :  { %272 = dma.done.wait [#allocation9], 16  }
  0x49   :  { %273 = vsyncadd [#allocation9], 4294967280 }
  0x4a   :  { %162 = sfence }
  0x4b   :  { %163 = vsyncpa [#allocation3], 1 }
  0x4c   :  { %164 = vsyncpa [#allocation6], 1 }
  0x4d   :  { %165 = vsyncpa [#allocation4], 1 }
  0x4e   :  { %166 = vsyncpa [#allocation9], 1 }

</bundles_post_ra>
